<compile_context>
chip_gen: v6e
topology: v6e:2x2x1
jax: 0.10.0
libtpu: 0.0.40
codegen_flags: <defaults>
</compile_context>

<pallas_src>
import jax
import jax.numpy as jnp
import numpy as np
from jax.experimental import pallas as pl
from jax.experimental.pallas import tpu as pltpu

_LANE = 128
_SUB = 8


def _cdiv(a, b):
    return -(-a // b)


def _round_up(a, b):
    return _cdiv(a, b) * b


def _make_kernel(n_valid, feat_rows_valid):
    """n_valid: true sample count N; feat_rows_valid: true rows of the feature slab."""

    def kernel(pred_ref, tgt_ref, w_ref, fa_ref, fb_ref, part_ref):
        i = pl.program_id(0)

        # ---- classification path: (C, TN) tile, samples on the lane axis ----
        pred = pred_ref[...]          # (C, TN) f32
        tgt = tgt_ref[...]            # (1, TN) i32 (tail columns = garbage, masked)
        w = w_ref[...]                # (C, 1)  f32
        c, tn = pred.shape

        col = jax.lax.broadcasted_iota(jnp.int32, (c, tn), 1) + i * tn
        cls = jax.lax.broadcasted_iota(jnp.int32, (c, tn), 0)
        sel = jnp.logical_and(cls == tgt, col < n_valid)      # valid & target class

        # log_softmax over classes (short sublane reductions).
        m = jnp.max(pred, axis=0, keepdims=True)               # (1, TN)
        z = pred - m
        lse = jnp.log(jnp.sum(jnp.exp(z), axis=0, keepdims=True))
        logp = z - lse                                          # (C, TN)

        # where-selects: garbage / -inf in masked columns never reaches the sums.
        nll_tile = -jnp.sum(jnp.where(sel, logp, 0.0))          # sum_n -logp[n, t_n]
        w_tile = jnp.sum(jnp.where(sel, w, 0.0))                # sum_n weight[t_n]

        # ---- feature path: (TF, FC) tile (lane-dense slab or raw (N, D)) ----
        fa = fa_ref[...]
        fb = fb_ref[...]
        tf, fc = fa.shape
        row = jax.lax.broadcasted_iota(jnp.int32, (tf, fc), 0) + i * tf
        diff = fa - fb
        feat_tile = jnp.sum(jnp.where(row < feat_rows_valid, diff * diff, 0.0))

        # ---- per-tile partials -> independent (1, 8, 128) output block ----
        # rows: 0 = nll partial, 1 = weight partial, 2 = feature partial.
        ridx = jax.lax.broadcasted_iota(jnp.int32, (_SUB, _LANE), 0)
        part = jnp.where(ridx == 0, nll_tile,
                         jnp.where(ridx == 1, w_tile,
                                   jnp.where(ridx == 2, feat_tile, 0.0)))
        part_ref[0] = part

    return kernel


def get_loss(pred, target, trans_feat, target_feat, weight, *, max_step_bytes=12 * 2**20):
    """pred: (N, C) f32, target: (N,) int, trans_feat/target_feat: (N, D) f32,
    weight: (C,) f32. Returns scalar f32 loss."""
    pred = jnp.asarray(pred, jnp.float32)
    target = jnp.asarray(target, jnp.int32)
    trans_feat = jnp.asarray(trans_feat, jnp.float32)
    target_feat = jnp.asarray(target_feat, jnp.float32)
    weight = jnp.asarray(weight, jnp.float32)

    n, c = pred.shape
    d = trans_feat.shape[-1]
    inv_n = 1.0 / float(n)

    # ---- classification layout: samples on the lane axis, NO padding ----
    pred_t = pred.T                   # (C, N): one small copy, acceptable for C << D
    tgt_row = target.reshape(1, n)    # (1, N)
    w_col = weight.reshape(c, 1)      # (C, 1)

    # ---- feature layout: lane-dense slab iff the flatten is a free row-major reshape ----
    flat = n * d
    if flat % _LANE == 0:
        fr, fc = flat // _LANE, _LANE
        fa = trans_feat.reshape(fr, fc)
        fb = target_feat.reshape(fr, fc)
    else:
        fr, fc = n, d                 # (N, D): last dim == full dim, no padding needed
        fa, fb = trans_feat, target_feat

    # ---- budget-driven tile sizing (accounts for C and D via VMEM-padded footprints) ----
    c_pad = _round_up(c, _SUB)
    fc_pad = _round_up(fc, _LANE)

    def step_bytes(tn_, tf_):
        # pred tile + target row tile (8-sublane padded) + 2 feature tiles (lane padded)
        return 4 * tn_ * (c_pad + _SUB) + 2 * 4 * tf_ * fc_pad

    g = 1
    while True:
        tn = n if g == 1 else min(n, _round_up(_cdiv(n, g), _LANE))
        tf = fr if g == 1 else min(fr, _round_up(_cdiv(fr, g), _SUB))
        if step_bytes(tn, tf) <= max_step_bytes or (tn <= _LANE and tf <= _SUB):
            break
        g += 1

    n_cb = _cdiv(n, tn)    # real classification blocks (may be < g: clamp index, mask data)
    n_fb = _cdiv(fr, tf)   # real feature blocks

    grid_spec = pltpu.PrefetchScalarGridSpec(
        num_scalar_prefetch=0,
        grid=(g,),
        in_specs=[
            pl.BlockSpec((c, tn), lambda i: (0, jnp.minimum(i, n_cb - 1))),   # pred (C, N)
            pl.BlockSpec((1, tn), lambda i: (0, jnp.minimum(i, n_cb - 1))),   # target row
            pl.BlockSpec((c, 1), lambda i: (0, 0)),                           # weight column
            pl.BlockSpec((tf, fc), lambda i: (jnp.minimum(i, n_fb - 1), 0)),  # trans_feat
            pl.BlockSpec((tf, fc), lambda i: (jnp.minimum(i, n_fb - 1), 0)),  # target_feat
        ],
        out_specs=pl.BlockSpec((1, _SUB, _LANE), lambda i: (i, 0, 0)),        # per-tile partials
    )

    cost = pl.CostEstimate(
        flops=int(3 * n * d + 8 * n * c),
        transcendentals=int(n * c + n),
        bytes_accessed=int(4 * (n * c + n + 2 * n * d + c + g * _SUB * _LANE)),
    )

    parts = pl.pallas_call(
        _make_kernel(n, fr),
        out_shape=jax.ShapeDtypeStruct((g, _SUB, _LANE), jnp.float32),
        grid_spec=grid_spec,
        compiler_params=pltpu.CompilerParams(
            # "parallel": no carried accumulator, so v7x may split steps across both TCs.
            dimension_semantics=("parallel",),
            # adaptive scoped-VMEM: >= 2x per-step tiles + slack, capped below v7x physical.
            vmem_limit_bytes=int(min(48 * 2**20, max(16 * 2**20, 3 * step_bytes(tn, tf)))),
        ),
        cost_estimate=cost,
    )(pred_t, tgt_row, w_col, fa, fb)

    # Tiny final combine over g per-tile partials + compile-time 1/N folding.
    nll_sum = jnp.sum(parts[:, 0, 0])
    w_sum = jnp.sum(parts[:, 1, 0])
    feat_sum = jnp.sum(parts[:, 2, 0])
    return (nll_sum * w_sum) * (inv_n * inv_n) + feat_sum * inv_n


def get_loss_ref(pred, target, trans_feat, target_feat, weight):
    """Pure-JAX reference mirroring the PyTorch module."""
    logp = jax.nn.log_softmax(pred, axis=1)
    nll = -jnp.mean(jnp.take_along_axis(logp, target[:, None], axis=1))
    w_term = jnp.mean(weight[target])
    feat = jnp.mean(jnp.sum((trans_feat - target_feat) ** 2, axis=1))
    return nll * w_term + feat


if __name__ == "__main__":
    key = jax.random.PRNGKey(0)
    k1, k2, k3, k4 = jax.random.split(key, 4)

    weight = jnp.array([0.5, 1.0, 2.0], dtype=jnp.float32)   # from GetLoss.__init__
    C = weight.shape[0]

    # Case 1: small shapes implied by the module -> single-block (g == 1) path,
    # lane-dense feature slab (N*D % 128 == 0).
    N, D = 8, 32
    pred = jax.random.normal(k1, (N, C), dtype=jnp.float32)
    target = jax.random.randint(k2, (N,), 0, C, dtype=jnp.int32)
    trans_feat = jax.random.normal(k3, (N, D), dtype=jnp.float32)
    target_feat = jax.random.normal(k4, (N, D), dtype=jnp.float32)

    out = jax.block_until_ready(get_loss(pred, target, trans_feat, target_feat, weight))
    ref = jax.block_until_ready(get_loss_ref(pred, target, trans_feat, target_feat, weight))
    assert np.allclose(np.asarray(out), np.asarray(ref), rtol=1e-4, atol=1e-4), (out, ref)

    # Case 2: ragged shapes (N*D not a multiple of 128) + tiny budget -> tiled (N, D)
    # feature path, clamped classification blocks, in-kernel tail masks.
    N2, D2 = 300, 30
    k5, k6, k7, k8 = jax.random.split(jax.random.PRNGKey(1), 4)
    pred2 = jax.random.normal(k5, (N2, C), dtype=jnp.float32)
    target2 = jax.random.randint(k6, (N2,), 0, C, dtype=jnp.int32)
    trans2 = jax.random.normal(k7, (N2, D2), dtype=jnp.float32)
    tgtf2 = jax.random.normal(k8, (N2, D2), dtype=jnp.float32)
    out2 = jax.block_until_ready(
        get_loss(pred2, target2, trans2, tgtf2, weight, max_step_bytes=96 * 1024))
    ref2 = jax.block_until_ready(get_loss_ref(pred2, target2, trans2, tgtf2, weight))
    assert np.allclose(np.asarray(out2), np.asarray(ref2), rtol=1e-4, atol=1e-4), (out2, ref2)

    # Case 3: lane-dense (R, 128) feature slab, tiled with partial last blocks.
    N3, D3 = 256, 64
    k9, k10, k11, k12 = jax.random.split(jax.random.PRNGKey(2), 4)
    pred3 = jax.random.normal(k9, (N3, C), dtype=jnp.float32)
    target3 = jax.random.randint(k10, (N3,), 0, C, dtype=jnp.int32)
    trans3 = jax.random.normal(k11, (N3, D3), dtype=jnp.float32)
    tgtf3 = jax.random.normal(k12, (N3, D3), dtype=jnp.float32)
    out3 = jax.block_until_ready(
        get_loss(pred3, target3, trans3, tgtf3, weight, max_step_bytes=48 * 1024))
    ref3 = jax.block_until_ready(get_loss_ref(pred3, target3, trans3, tgtf3, weight))
    assert np.allclose(np.asarray(out3), np.asarray(ref3), rtol=1e-4, atol=1e-4), (out3, ref3)

    print("KERNEL_OK")
</pallas_src>

<mosaic_0001>
module attributes {stable_mosaic.version = 11 : i64} {
  func.func @kernel(%arg0: i32, %arg1: memref<3x8xf32, #tpu.memory_space<vmem>>, %arg2: memref<1x8xi32, #tpu.memory_space<vmem>>, %arg3: memref<3x1xf32, #tpu.memory_space<vmem>>, %arg4: memref<2x128xf32, #tpu.memory_space<vmem>>, %arg5: memref<2x128xf32, #tpu.memory_space<vmem>>, %arg6: memref<1x8x128xf32, #tpu.memory_space<vmem>>) attributes {dimension_semantics = [#tpu.dimension_semantics<parallel>], iteration_bounds = array<i64: 1>, scalar_prefetch = 0 : i64, scratch_operands = 0 : i64, tpu.core_type = #tpu.core_type<tc>, window_params = [{transform_indices = @transform_0, window_bounds = array<i64: 3, 8>}, {transform_indices = @transform_1, window_bounds = array<i64: 1, 8>}, {pipeline_mode = #tpu.pipeline_mode<synchronous>, transform_indices = @transform_2, window_bounds = array<i64: 3, 1>}, {transform_indices = @transform_3, window_bounds = array<i64: 2, 128>}, {transform_indices = @transform_4, window_bounds = array<i64: 2, 128>}, {transform_indices = @transform_5, window_bounds = array<i64: 1, 8, 128>}]} {
    %c0 = arith.constant 0 : index
    %c0_0 = arith.constant 0 : index
    %0 = vector.load %arg1[%c0, %c0_0] : memref<3x8xf32, #tpu.memory_space<vmem>>, vector<3x8xf32>
    %c0_1 = arith.constant 0 : index
    %c0_2 = arith.constant 0 : index
    %1 = vector.load %arg2[%c0_1, %c0_2] : memref<1x8xi32, #tpu.memory_space<vmem>>, vector<1x8xi32>
    %c0_3 = arith.constant 0 : index
    %c0_4 = arith.constant 0 : index
    %2 = vector.load %arg3[%c0_3, %c0_4] : memref<3x1xf32, #tpu.memory_space<vmem>>, vector<3x1xf32>
    %3 = tpu.iota {dimensions = array<i32: 1>} : vector<3x8xi32>
    %c8_i32 = arith.constant 8 : i32
    %4 = arith.muli %arg0, %c8_i32 : i32
    %5 = vector.broadcast %4 : i32 to vector<3x8xi32>
    %6 = arith.addi %3, %5 : vector<3x8xi32>
    %7 = tpu.iota {dimensions = array<i32: 0>} : vector<3x8xi32>
    %8 = vector.broadcast %1 : vector<1x8xi32> to vector<3x8xi32>
    %9 = arith.cmpi eq, %7, %8 : vector<3x8xi32>
    %c8_i32_5 = arith.constant 8 : i32
    %10 = vector.broadcast %c8_i32_5 : i32 to vector<3x8xi32>
    %11 = arith.cmpi slt, %6, %10 : vector<3x8xi32>
    %12 = arith.andi %9, %11 : vector<3x8xi1>
    %cst = arith.constant dense<0xFF800000> : vector<8xf32>
    %13 = vector.multi_reduction <maximumf>, %0, %cst [0] : vector<3x8xf32> to vector<8xf32>
    %14 = vector.shape_cast %13 : vector<8xf32> to vector<1x8xf32>
    %15 = vector.broadcast %14 : vector<1x8xf32> to vector<3x8xf32>
    %16 = arith.subf %0, %15 : vector<3x8xf32>
    %17 = math.exp %16 : vector<3x8xf32>
    %cst_6 = arith.constant dense<0.000000e+00> : vector<8xf32>
    %18 = vector.multi_reduction <add>, %17, %cst_6 [0] : vector<3x8xf32> to vector<8xf32>
    %19 = vector.shape_cast %18 : vector<8xf32> to vector<1x8xf32>
    %20 = math.log %19 : vector<1x8xf32>
    %21 = vector.broadcast %20 : vector<1x8xf32> to vector<3x8xf32>
    %22 = arith.subf %16, %21 : vector<3x8xf32>
    %cst_7 = arith.constant 0.000000e+00 : f32
    %23 = vector.broadcast %cst_7 : f32 to vector<3x8xf32>
    %24 = arith.select %12, %22, %23 : vector<3x8xi1>, vector<3x8xf32>
    %25 = vector.shape_cast %24 : vector<3x8xf32> to vector<1x3x8xf32>
    %cst_8 = arith.constant dense<0.000000e+00> : vector<1xf32>
    %26 = vector.multi_reduction <add>, %25, %cst_8 [1, 2] : vector<1x3x8xf32> to vector<1xf32>
    %27 = vector.shape_cast %26 : vector<1xf32> to vector<1x1x1xf32>
    %28 = vector.extract %27[0, 0, 0] : f32 from vector<1x1x1xf32>
    %cst_9 = arith.constant 0.000000e+00 : f32
    %29 = arith.subf %cst_9, %28 : f32
    %cst_10 = arith.constant 0.000000e+00 : f32
    %30 = vector.shape_cast %2 : vector<3x1xf32> to vector<3x1xf32>
    %31 = vector.broadcast %30 : vector<3x1xf32> to vector<3x8xf32>
    %32 = vector.broadcast %cst_10 : f32 to vector<3x8xf32>
    %33 = arith.select %12, %31, %32 : vector<3x8xi1>, vector<3x8xf32>
    %34 = vector.shape_cast %33 : vector<3x8xf32> to vector<1x3x8xf32>
    %cst_11 = arith.constant dense<0.000000e+00> : vector<1xf32>
    %35 = vector.multi_reduction <add>, %34, %cst_11 [1, 2] : vector<1x3x8xf32> to vector<1xf32>
    %36 = vector.shape_cast %35 : vector<1xf32> to vector<1x1x1xf32>
    %37 = vector.extract %36[0, 0, 0] : f32 from vector<1x1x1xf32>
    %c0_12 = arith.constant 0 : index
    %c0_13 = arith.constant 0 : index
    %38 = vector.load %arg4[%c0_12, %c0_13] : memref<2x128xf32, #tpu.memory_space<vmem>>, vector<2x128xf32>
    %c0_14 = arith.constant 0 : index
    %c0_15 = arith.constant 0 : index
    %39 = vector.load %arg5[%c0_14, %c0_15] : memref<2x128xf32, #tpu.memory_space<vmem>>, vector<2x128xf32>
    %40 = tpu.iota {dimensions = array<i32: 0>} : vector<2x128xi32>
    %c2_i32 = arith.constant 2 : i32
    %41 = arith.muli %arg0, %c2_i32 : i32
    %42 = vector.broadcast %41 : i32 to vector<2x128xi32>
    %43 = arith.addi %40, %42 : vector<2x128xi32>
    %44 = arith.subf %38, %39 : vector<2x128xf32>
    %c2_i32_16 = arith.constant 2 : i32
    %45 = vector.broadcast %c2_i32_16 : i32 to vector<2x128xi32>
    %46 = arith.cmpi slt, %43, %45 : vector<2x128xi32>
    %47 = arith.mulf %44, %44 : vector<2x128xf32>
    %cst_17 = arith.constant 0.000000e+00 : f32
    %48 = vector.broadcast %cst_17 : f32 to vector<2x128xf32>
    %49 = arith.select %46, %47, %48 : vector<2x128xi1>, vector<2x128xf32>
    %50 = vector.shape_cast %49 : vector<2x128xf32> to vector<1x2x128xf32>
    %cst_18 = arith.constant dense<0.000000e+00> : vector<1xf32>
    %51 = vector.multi_reduction <add>, %50, %cst_18 [1, 2] : vector<1x2x128xf32> to vector<1xf32>
    %52 = vector.shape_cast %51 : vector<1xf32> to vector<1x1x1xf32>
    %53 = vector.extract %52[0, 0, 0] : f32 from vector<1x1x1xf32>
    %54 = tpu.iota {dimensions = array<i32: 0>} : vector<8x128xi32>
    %c0_i32 = arith.constant 0 : i32
    %55 = vector.broadcast %c0_i32 : i32 to vector<8x128xi32>
    %56 = arith.cmpi eq, %54, %55 : vector<8x128xi32>
    %c1_i32 = arith.constant 1 : i32
    %57 = vector.broadcast %c1_i32 : i32 to vector<8x128xi32>
    %58 = arith.cmpi eq, %54, %57 : vector<8x128xi32>
    %c2_i32_19 = arith.constant 2 : i32
    %59 = vector.broadcast %c2_i32_19 : i32 to vector<8x128xi32>
    %60 = arith.cmpi eq, %54, %59 : vector<8x128xi32>
    %cst_20 = arith.constant 0.000000e+00 : f32
    %61 = vector.broadcast %53 : f32 to vector<8x128xf32>
    %62 = vector.broadcast %cst_20 : f32 to vector<8x128xf32>
    %63 = arith.select %60, %61, %62 : vector<8x128xi1>, vector<8x128xf32>
    %64 = vector.broadcast %37 : f32 to vector<8x128xf32>
    %65 = arith.select %58, %64, %63 : vector<8x128xi1>, vector<8x128xf32>
    %66 = vector.broadcast %29 : f32 to vector<8x128xf32>
    %67 = arith.select %56, %66, %65 : vector<8x128xi1>, vector<8x128xf32>
    %c0_21 = arith.constant 0 : index
    %c0_22 = arith.constant 0 : index
    %c0_23 = arith.constant 0 : index
    %68 = vector.load %arg6[%c0_21, %c0_22, %c0_23] : memref<1x8x128xf32, #tpu.memory_space<vmem>>, vector<1x8x128xf32>
    %69 = vector.shape_cast %68 : vector<1x8x128xf32> to vector<8x128xf32>
    %70 = vector.shape_cast %67 : vector<8x128xf32> to vector<1x8x128xf32>
    tpu.vector_store %arg6[%c0_21, %c0_22, %c0_23], %70 {strides = array<i32>} : memref<1x8x128xf32, #tpu.memory_space<vmem>>, vector<1x8x128xf32>,
    return
  }
  func.func @transform_0(%arg0: i32) -> (i32, i32) {
    %c0_i32 = arith.constant 0 : i32
    %0 = arith.minsi %arg0, %c0_i32 : i32
    %c0_i32_0 = arith.constant 0 : i32
    %c0_i32_1 = arith.constant 0 : i32
    return %c0_i32_0, %0 : i32, i32
  }
  func.func @transform_1(%arg0: i32) -> (i32, i32) {
    %c0_i32 = arith.constant 0 : i32
    %0 = arith.minsi %arg0, %c0_i32 : i32
    %c0_i32_0 = arith.constant 0 : i32
    %c0_i32_1 = arith.constant 0 : i32
    return %c0_i32_0, %0 : i32, i32
  }
  func.func @transform_2(%arg0: i32) -> (i32, i32) {
    %c0_i32 = arith.constant 0 : i32
    %c0_i32_0 = arith.constant 0 : i32
    %c0_i32_1 = arith.constant 0 : i32
    return %c0_i32, %c0_i32_0 : i32, i32
  }
  func.func @transform_3(%arg0: i32) -> (i32, i32) {
    %c0_i32 = arith.constant 0 : i32
    %0 = arith.minsi %arg0, %c0_i32 : i32
    %c0_i32_0 = arith.constant 0 : i32
    %c0_i32_1 = arith.constant 0 : i32
    return %0, %c0_i32_0 : i32, i32
  }
  func.func @transform_4(%arg0: i32) -> (i32, i32) {
    %c0_i32 = arith.constant 0 : i32
    %0 = arith.minsi %arg0, %c0_i32 : i32
    %c0_i32_0 = arith.constant 0 : i32
    %c0_i32_1 = arith.constant 0 : i32
    return %0, %c0_i32_0 : i32, i32
  }
  func.func @transform_5(%arg0: i32) -> (i32, i32, i32) {
    %c0_i32 = arith.constant 0 : i32
    %c0_i32_0 = arith.constant 0 : i32
    %c0_i32_1 = arith.constant 0 : i32
    return %arg0, %c0_i32, %c0_i32_0 : i32, i32, i32
  }
}

</mosaic_0001>

<bundles_post_ra>
// kernel: tpu_custom_call.1
= control target key start
LH: loop header
LB: loop body
LE: loop exit
PB: predicated region body
PF: predicated region fallthrough
CT: control target
= control target key end

     0   :  { %10 = vsyncpa [#allocation3], 0  ;;  %s265_s0 = inlined_call_operand.vmem [shape: f32[3,8], index: 0, kind: input, shape index: {}]   ;;  %s266_s1 = inlined_call_operand.hbm [shape: s32[1,8], index: 1, kind: input, shape index: {}]   ;;  %s267_s2 = inlined_call_operand.vmem [shape: f32[3,1], index: 2, kind: input, shape index: {}]   ;;  %s268_s3 = inlined_call_operand.vmem [shape: f32[2,128], index: 3, kind: input, shape index: {}]   ;;  %s269_s4 = inlined_call_operand.vmem [shape: f32[2,128], index: 4, kind: input, shape index: {}]   ;;  %s270_s5 = inlined_call_operand.hbm [shape: f32[1,8,128], index: 5, kind: output, shape index: {}]  }
   0x1   :  { %11 = vsyncpa [#allocation4], 0  ;;  %s203_s18 = smov [#allocation2]  }
   0x2   :  { %s20_s19 = sshll.u32 %s203_s18, 4  ;;  %s21_s19 = int_to_ptr.vmem [resolvable:$true] %s20_s19 }
   0x3   :  { %s167_s20 = scalar_lea.vmem %s21_s19, 16  ;;  %s171_s21 = scalar_lea.vmem %s21_s19, 32 }
   0x4   :  { %p168_p0 = scmp.ne.s32.totalorder %s21_s19, %s167_s20  ;;  %p172_p1 = scmp.lt.s32.totalorder %s21_s19, %s21_s19 }
   0x5   :  { %p173_p2 = scmp.lt.s32.totalorder %s171_s21, %s167_s20 }
   0x7   :  { %p174_p3 = por %p173_p2, %p172_p1 }
   0x9   :  { %p175_p4 = pnand %p174_p3, %p168_p0 }
   0xb   :  { %178 = shalt.err (!%p175_p4)
}
   0xc   :  { %23 = dma.hbm_to_vmem [thread:$0]  %s266_s1, 16, %s21_s19, [#allocation3]  }
   0xd   :  { %199 = dma.done.wait [#allocation3], 16  }
   0xe   :  { %200 = vsyncadd [#allocation3], 4294967280  ;;  %v204_v0 = vmov 0   ;;  %vm50_vm0 = vcmask 59392   ;;  %v35_v1 = vld [vmem:[%s267_s2] sm:$0x7]  ;;  %v36_v20 = vlaneseq }
   0xf   :  { %154 = vset.pattern.permute.xlu0 %v204_v0  ;;  %v33_v2 = vld [vmem:[%s265_s0] sm:$0x7]  ;;  %vm108_vm5 = vcmask 1041408   ;;  %s205_s6 = smov [#allocation5]  }
  0x10   :  { %85 = vperm.xlu0 %154, %v35_v1   ;;  %v51_v3 = vsel %vm50_vm0, %v33_v2, -inf  ;;  %v37_v21 = vand.u32 127, %v36_v20  ;;  %v247_v22 = vshrl.u32 %v36_v20, 7  ;;  %v144_v23 = vld [vmem:[#allocation2] ss:$0 sm:$0xff]  ;;  %s135_s7 = sshll.u32 %s205_s6, 4  ;;  %s136_s7 = int_to_ptr.vmem [resolvable:$true] %s135_s7 }
  0x11   :  { %v52_v4 = vrot.slane %v51_v3, 4  ;;  %v99_v29 = vld [vmem:[%s268_s3] sm:$0x3]  ;;  %s179_s8 = scalar_lea.vmem %s136_s7, 128  ;;  %p184_p6 = scmp.lt.s32.totalorder %s136_s7, %s136_s7 }
  0x12   :  { %vm48_vm1 = vcmp.lt.s32.totalorder %v37_v21, 8  ;;  %vm47_vm2 = vcmp.eq.s32.totalorder %v247_v22, %v144_v23  ;;  %v100_v30 = vld [vmem:[%s269_s4] sm:$0x3]  ;;  %vm105_vm4 = vcmp.lt.s32.totalorder %v247_v22, 2  ;;  %vm121_vm6 = vcmp.eq.s32.totalorder %v247_v22, 2  ;;  %p180_p5 = scmp.ne.s32.totalorder %s136_s7, %s179_s8  ;;  %p185_p7 = scmp.lt.s32.totalorder %s179_s8, %s179_s8 }
  0x13   :  { %v53_v5 = vmax.f32 %v51_v3, %v52_v4  ;;  %vm49_vm3 = vmand %vm47_vm2, %vm48_vm1  ;;  %v104_v31 = vsub.f32 %v99_v29, %v100_v30  ;;  %vm120_vm7 = vcmp.eq.s32.totalorder %v247_v22, 1  ;;  %vm119_vm8 = vcmp.eq.s32.totalorder %v247_v22, 0 }
  0x14   :  { %p186_p8 = por %p185_p7, %p184_p6 }
  0x15   :  { %v54_v6 = vrot.slane %v53_v5, 2  ;;  %v106_v32 = vmul.f32 %v104_v31, %v104_v31 }
  0x16   :  { %p187_p9 = pnand %p186_p8, %p180_p5 }
  0x17   :  { %v55_v7 = vmax.f32 %v53_v5, %v54_v6  ;;  %v107_v35 = vsel %vm105_vm4, %v106_v32, 0.0 }
  0x18   :  { %v109_v37 = vsel %vm108_vm5, %v107_v35, 0.0 }
  0x19   :  { %v56_v8 = vrot.slane %v55_v7, 1 }
  0x1b   :  { %v57_v9 = vmax.f32 %v55_v7, %v56_v8 }
  0x1d   :  { %v58_v10 = vsub.f32 %v33_v2, %v57_v9 }
  0x1f   :  { %v59_v11 = vmul.f32 1.442695, %v58_v10 }
  0x21   :  { %155 = vpow2.f32 %v59_v11 }
  0x2e   :  { %v156_v12 = vpop.eup %155 }
  0x2f   :  { %v61_v13 = vsel %vm50_vm0, %v156_v12, 0.0 }
  0x30   :  { %v62_v14 = vrot.slane %v61_v13, 4 }
  0x32   :  { %v63_v15 = vadd.f32 %v62_v14, %v61_v13 }
  0x34   :  { %v64_v16 = vrot.slane %v63_v15, 2 }
  0x36   :  { %v65_v17 = vadd.f32 %v64_v16, %v63_v15 }
  0x38   :  { %v66_v18 = vrot.slane %v65_v17, 1 }
  0x3a   :  { %v67_v19 = vadd.f32 %v66_v18, %v65_v17 }
  0x3c   :  { %157 = vlog2.f32 %v67_v19 }
  0x49   :  { %v158_v24 = vpop.eup %157 }
  0x4a   :  { %v69_v25 = vmul.f32 0.6931472, %v158_v24 }
  0x4c   :  { %v70_v26 = vsub.f32 %v58_v10, %v69_v25 }
  0x4e   :  { %v71_v27 = vsel %vm49_vm3, %v70_v26, 0.0 }
  0x4f   :  { %v72_v28 = vsel %vm50_vm0, %v71_v27, 0.0 }
  0x50   :  { %73 = vadd.xlane.f32.xlu0 %v72_v28 }
  0x8b   :  { %v86_v33 = vpop.permute.xlu0 %85 }
  0x8c   :  { %v88_v34 = vsel %vm49_vm3, %v86_v33, 0.0 }
  0x8d   :  { %v89_v36 = vsel %vm50_vm0, %v88_v34, 0.0 }
  0x8e   :  { %90 = vadd.xlane.f32.xlu1 %v89_v36 }
  0x92   :  { %110 = vadd.xlane.f32.xlu1 %v109_v37 }
  0xd9   :  { %v74_v38 = vpop.xlane.xlu0 %73 }
  0xda   :  { %v75_v39 = vrot.slane %v74_v38, 4 }
  0xdc   :  { %v76_v40 = vadd.f32 %v75_v39, %v74_v38 }
  0xde   :  { %v77_v41 = vrot.slane %v76_v40, 2 }
  0xe0   :  { %v78_v42 = vadd.f32 %v77_v41, %v76_v40 }
  0xe2   :  { %v79_v43 = vrot.slane %v78_v42, 1 }
  0xe4   :  { %v80_v44 = vadd.f32 %v79_v43, %v78_v42 }
  0xe6   :  { %145 = vpush %v80_v44 }
 0x117   :  { %v91_v45 = vpop.xlane.xlu1 %90  ;;  %s146_s3 = spop %145 }
 0x118   :  { %v92_v46 = vrot.slane %v91_v45, 4  ;;  %s82_s4 = ssub.f32 0.0, %s146_s3 }
 0x11a   :  { %v93_v47 = vadd.f32 %v92_v46, %v91_v45  ;;  %v126_v62 = vstv %s82_s4 }
 0x11b   :  { %v111_v48 = vpop.xlane.xlu1 %110 }
 0x11c   :  { %v94_v49 = vrot.slane %v93_v47, 2  ;;  %v112_v50 = vrot.slane %v111_v48, 4 }
 0x11e   :  { %v113_v51 = vadd.f32 %v112_v50, %v111_v48  ;;  %v95_v52 = vadd.f32 %v94_v49, %v93_v47 }
 0x120   :  { %v114_v53 = vrot.slane %v113_v51, 2  ;;  %v96_v54 = vrot.slane %v95_v52, 1 }
 0x122   :  { %v115_v55 = vadd.f32 %v114_v53, %v113_v51  ;;  %v97_v56 = vadd.f32 %v96_v54, %v95_v52 }
 0x124   :  { %147 = vpush %v97_v56  ;;  %v116_v57 = vrot.slane %v115_v55, 1 }
 0x126   :  { %v117_v58 = vadd.f32 %v116_v57, %v115_v55 }
 0x128   :  { %149 = vpush %v117_v58 }
 0x155   :  { %s148_s29 = spop %147 }
 0x156   :  { %v124_v60 = vstv %s148_s29 }
 0x159   :  { %s150_s30 = spop %149 }
 0x15a   :  { %v122_v59 = vstv %s150_s30 }
 0x15b   :  { %v123_v61 = vsel %vm121_vm6, %v122_v59, 0.0 }
 0x15c   :  { %v125_v63 = vsel %vm120_vm7, %v124_v60, %v123_v61 }
 0x15d   :  { %v127_v0 = vsel %vm119_vm8, %v126_v62, %v125_v63 }
 0x15e   :  { %128 = vst [vmem:[#allocation5] sm:$0xff] %v127_v0 }
 0x15f   :  { %190 = shalt.err (!%p187_p9)
}
 0x160   :  { %138 = dma.vmem_to_hbm [thread:$0]  %s136_s7, 128, %s270_s5, [#allocation4]  }
 0x161   :  { %201 = dma.done.wait [#allocation4], 128  }
 0x162   :  { %202 = vsyncadd [#allocation4], 4294967168 }
 0x163   :  { %142 = vsyncpa [#allocation3], 1 }
 0x164   :  { %143 = vsyncpa [#allocation4], 1 }

</bundles_post_ra>
